<compile_context>
chip_gen: v7x
topology: tpu7x:2x2x1
jax: 0.10.0
libtpu: 0.0.40
codegen_flags: <defaults>
</compile_context>

<pallas_src>
import jax
import jax.numpy as jnp
from jax.experimental import pallas as pl
from jax.experimental.pallas import tpu as pltpu


# --------------------------------------------------------------------------
# Kernel
# --------------------------------------------------------------------------
def _fused_head_kernel(lvl_ref, img_ref, blk_ref, p_ref, w_ref, b_ref, o_ref):
    """One (level, image, spatial-tile) step of the fused SSD scoring head.

    p_ref: (1, KCmax, T)     bf16 im2col patch tile (lane-dense spatial)
    w_ref: (1, Cmax, KCmax)  bf16 per-level transposed 3x3 conv weights
    b_ref: (1, Cmax, 1)      f32  per-level bias
    o_ref: (1, Cmax, T)      f32  conv-output tile
    (lvl/img/blk scalar-prefetch refs are only used by the index_maps.)
    """
    acc = jnp.dot(w_ref[0], p_ref[0],
                  preferred_element_type=jnp.float32)   # MXU, f32 accumulate
    o_ref[0] = acc + b_ref[0]                           # f32 bias add (VPU)


# --------------------------------------------------------------------------
# Wrapper helpers
# --------------------------------------------------------------------------
def _round_up(x, m):
    return ((x + m - 1) // m) * m


def _pick_tile(kc_max, cout_max, max_level_hw, vmem_budget=12 << 20):
    """Largest lane tile that (a) does not exceed the largest level and
    (b) keeps the double-buffered P/out blocks + single-buffered weights
    inside a conservative budget (fits v5e's 16 MiB default scoped VMEM,
    and therefore v6e's 32 MiB and v7x's 64 MiB-total as well)."""
    max_hw128 = max(128, _round_up(max_level_hw, 128))
    resident = cout_max * kc_max * 2 + cout_max * 4      # Buffered(1) w + b
    for t in (1024, 512, 384, 256, 128):
        if t > max_hw128:
            continue
        blocks = 2 * (kc_max * t * 2) + 2 * (cout_max * t * 4)   # P + out (x2 buf)
        if blocks + resident <= vmem_budget:
            return t
    return 128


def _im2col_bf16(x_nchw):
    """(N, Cin, H, W) f32 -> (N, 9*Cin, H*W) bf16, tap-major ((kh*3+kw), ci).

    Cast happens on the 1x raw feature map (not the 9x patch tensor)."""
    n, c, h, w = x_nchw.shape
    xp = jnp.pad(x_nchw.astype(jnp.bfloat16), ((0, 0), (0, 0), (1, 1), (1, 1)))
    taps = [xp[:, :, kh:kh + h, kw:kw + w]
            for kh in range(3) for kw in range(3)]
    return jnp.stack(taps, axis=1).reshape(n, 9 * c, h * w)


# --------------------------------------------------------------------------
# Fused forward
# --------------------------------------------------------------------------
def ssd_scoring_head_forward(xs_nchw, params, num_columns):
    """Pallas-backed equivalent of SSDScoringHead.forward.

    xs_nchw: list of NCHW feature maps (one per level)
    params : list of (w_hwio, bias) per level, Cout_i = A_i * num_columns
    returns: (N, sum_i H_i*W_i*A_i, num_columns) float32
    """
    num_levels = len(xs_nchw)
    N = xs_nchw[0].shape[0]

    # ---- per-level geometry ------------------------------------------------
    kcs = [9 * x.shape[1] for x in xs_nchw]
    couts = [w.shape[-1] for (w, _) in params]
    hws = [x.shape[2] * x.shape[3] for x in xs_nchw]

    kc_max = _round_up(max(kcs), 16)     # bf16 sublane packing
    cout_max = _round_up(max(couts), 8)  # f32 output sublanes
    tile = _pick_tile(kc_max, cout_max, max(hws))

    hw_pads = [_round_up(hw, tile) for hw in hws]   # every level = whole tiles
    col_offs = [0]
    for hp in hw_pads[:-1]:
        col_offs.append(col_offs[-1] + hp)
    total_hw = col_offs[-1] + hw_pads[-1]

    # ---- packed operands (bf16 build, pads fused per level) -----------------
    # NOTE: bf16 activations/weights limit accuracy to ~5e-2 vs the f32
    # PyTorch head; keep f32 operands for the bbox-regression head if that
    # deviation matters downstream.
    p_chunks, w_rows, b_rows = [], [], []
    for x, (w, b), kc, cout, hw, hp in zip(xs_nchw, params, kcs, couts,
                                           hws, hw_pads):
        p = _im2col_bf16(x)                                    # (N, kc, hw)
        p_chunks.append(jnp.pad(p, ((0, 0), (0, kc_max - kc), (0, hp - hw))))
        wt = w.reshape(kc, cout).T.astype(jnp.bfloat16)        # (cout, kc)
        w_rows.append(jnp.pad(wt, ((0, cout_max - cout), (0, kc_max - kc))))
        b_rows.append(jnp.pad(b.astype(jnp.float32), (0, cout_max - cout)))
    p_all = jnp.concatenate(p_chunks, axis=-1)                 # (N, KCmax, total_hw)
    w_all = jnp.stack(w_rows, axis=0)                          # (L, Cmax, KCmax)
    b_all = jnp.stack(b_rows, axis=0)[..., None]               # (L, Cmax, 1)

    # ---- fused schedule: level-major so the resident weight/bias block only
    #      re-DMAs at the L-1 level boundaries --------------------------------
    lvl_ids, img_ids, blk_ids = [], [], []
    for li in range(num_levels):
        for n in range(N):
            for t in range(hw_pads[li] // tile):
                lvl_ids.append(li)
                img_ids.append(n)
                blk_ids.append(col_offs[li] // tile + t)
    num_steps = len(lvl_ids)
    # 1-D int32 arrays -> cheap SMEM residency (no 2-D [R,C] padding blow-up).
    lvl_ids = jnp.asarray(lvl_ids, jnp.int32)
    img_ids = jnp.asarray(img_ids, jnp.int32)
    blk_ids = jnp.asarray(blk_ids, jnp.int32)

    cost = pl.CostEstimate(
        flops=int(2 * num_steps * cout_max * kc_max * tile),
        transcendentals=0,
        bytes_accessed=int(p_all.size) * 2 + int(w_all.size) * 2
        + int(b_all.size) * 4 + int(N * cout_max * total_hw) * 4,
    )

    def _run(use_buffered):
        resident = {"pipeline_mode": pl.Buffered(1)} if use_buffered else {}
        grid_spec = pltpu.PrefetchScalarGridSpec(
            num_scalar_prefetch=3,
            grid=(num_steps,),
            in_specs=[
                pl.BlockSpec((1, kc_max, tile),
                             lambda i, lvl, img, blk: (img[i], 0, blk[i])),
                pl.BlockSpec((1, cout_max, kc_max),
                             lambda i, lvl, img, blk: (lvl[i], 0, 0),
                             **resident),
                pl.BlockSpec((1, cout_max, 1),
                             lambda i, lvl, img, blk: (lvl[i], 0, 0),
                             **resident),
            ],
            out_specs=pl.BlockSpec((1, cout_max, tile),
                                   lambda i, lvl, img, blk: (img[i], 0, blk[i])),
        )
        return pl.pallas_call(
            _fused_head_kernel,
            out_shape=jax.ShapeDtypeStruct((N, cout_max, total_hw), jnp.float32),
            grid_spec=grid_spec,
            compiler_params=pltpu.CompilerParams(
                dimension_semantics=("parallel",)),
            cost_estimate=cost,
        )(lvl_ids, img_ids, blk_ids, p_all, w_all, b_all)

    try:
        # Preferred: single-buffered resident weights/bias (VMEM headroom).
        out_all = jax.block_until_ready(_run(True))
    except Exception:  # pragma: no cover - fallback for Pallas w/o Buffered(1)
        out_all = _run(False)

    # ---- per-level crop + (N, A*K, HW) -> (N, HW*A, K) layout (XLA) ---------
    # Identical ordering to PyTorch view(N,A,K,H,W).permute(0,3,4,1,2).reshape.
    outs = []
    for cout, hw, off in zip(couts, hws, col_offs):
        anchors = cout // num_columns
        y = out_all[:, :cout, off:off + hw]                    # (N, A*K, HW)
        y = y.reshape(N, anchors, num_columns, hw)
        y = jnp.transpose(y, (0, 3, 1, 2)).reshape(N, hw * anchors, num_columns)
        outs.append(y)
    return jnp.concatenate(outs, axis=1)


# --------------------------------------------------------------------------
# Pure-JAX f32 reference mirroring the PyTorch forward exactly
# --------------------------------------------------------------------------
def _ref_forward(xs_nchw, params, num_columns):
    outs = []
    for x, (w, b) in zip(xs_nchw, params):
        y = jax.lax.conv_general_dilated(
            x, w, window_strides=(1, 1), padding=((1, 1), (1, 1)),
            dimension_numbers=("NCHW", "HWIO", "NCHW"))
        y = y + b[None, :, None, None]
        n, c, h, w_ = y.shape
        anchors = c // num_columns
        y = y.reshape(n, anchors, num_columns, h, w_)
        y = jnp.transpose(y, (0, 3, 4, 1, 2))
        y = y.reshape(n, -1, num_columns)
        outs.append(y)
    return jnp.concatenate(outs, axis=1)


if __name__ == "__main__":
    key = jax.random.PRNGKey(0)
    num_columns = 4                      # e.g. 4 bbox-regression columns
    batch = 2
    # Two pyramid levels: (Cin, H, W, num_anchors)
    level_cfg = [(4, 16, 16, 4), (8, 8, 8, 6)]

    xs, params = [], []
    for (cin, h, w, anchors) in level_cfg:
        key, kx, kw, kb = jax.random.split(key, 4)
        xs.append(jax.random.normal(kx, (batch, cin, h, w), jnp.float32))
        cout = anchors * num_columns
        w_hwio = jax.random.normal(kw, (3, 3, cin, cout), jnp.float32) * 0.05
        bias = jax.random.normal(kb, (cout,), jnp.float32) * 0.01
        params.append((w_hwio, bias))

    out = ssd_scoring_head_forward(xs, params, num_columns)
    out = jax.block_until_ready(out)

    ref = _ref_forward(xs, params, num_columns)
    assert out.shape == ref.shape, (out.shape, ref.shape)
    # bf16 matmul inputs (f32 accumulation) -> loosened tolerance vs f32 ref.
    assert jnp.allclose(out, ref, atol=5e-2, rtol=5e-2), \
        float(jnp.max(jnp.abs(out - ref)))

    print("KERNEL_OK")
</pallas_src>

<mosaic_0001>
module attributes {stable_mosaic.version = 11 : i64} {
  func.func @_fused_head_kernel(%arg0: i32, %arg1: memref<4xi32, #tpu.memory_space<smem>>, %arg2: memref<4xi32, #tpu.memory_space<smem>>, %arg3: memref<4xi32, #tpu.memory_space<smem>>, %arg4: memref<1x80x256xbf16, #tpu.memory_space<vmem>>, %arg5: memref<1x24x80xbf16, #tpu.memory_space<vmem>>, %arg6: memref<1x24x1xf32, #tpu.memory_space<vmem>>, %arg7: memref<1x24x256xf32, #tpu.memory_space<vmem>>) attributes {dimension_semantics = [#tpu.dimension_semantics<parallel>], iteration_bounds = array<i64: 4>, scalar_prefetch = 3 : i64, scratch_operands = 0 : i64, tpu.core_type = #tpu.core_type<tc>, window_params = [{transform_indices = @transform_0, window_bounds = array<i64: 1, 80, 256>}, {pipeline_mode = #tpu.pipeline_mode<synchronous>, transform_indices = @transform_1, window_bounds = array<i64: 1, 24, 80>}, {pipeline_mode = #tpu.pipeline_mode<synchronous>, transform_indices = @transform_2, window_bounds = array<i64: 1, 24, 1>}, {transform_indices = @transform_3, window_bounds = array<i64: 1, 24, 256>}]} {
    %c0 = arith.constant 0 : index
    %c0_0 = arith.constant 0 : index
    %c0_1 = arith.constant 0 : index
    %0 = vector.load %arg5[%c0, %c0_0, %c0_1] : memref<1x24x80xbf16, #tpu.memory_space<vmem>>, vector<1x24x80xbf16>
    %1 = vector.shape_cast %0 : vector<1x24x80xbf16> to vector<24x80xbf16>
    %c0_2 = arith.constant 0 : index
    %c0_3 = arith.constant 0 : index
    %c0_4 = arith.constant 0 : index
    %2 = vector.load %arg4[%c0_2, %c0_3, %c0_4] : memref<1x80x256xbf16, #tpu.memory_space<vmem>>, vector<1x80x256xbf16>
    %3 = vector.shape_cast %2 : vector<1x80x256xbf16> to vector<80x256xbf16>
    %cst = arith.constant dense<0.000000e+00> : vector<24x256xf32>
    %4 = tpu.matmul %1, %3, %cst {dimension_numbers = #tpu.dot_dimension_numbers<[1], [0], [0], [1], [0, 0, 1, 1], [], []>} : vector<24x80xbf16>, vector<80x256xbf16>, vector<24x256xf32> -> vector<24x256xf32>
    %c0_5 = arith.constant 0 : index
    %c0_6 = arith.constant 0 : index
    %c0_7 = arith.constant 0 : index
    %5 = vector.load %arg6[%c0_5, %c0_6, %c0_7] : memref<1x24x1xf32, #tpu.memory_space<vmem>>, vector<1x24x1xf32>
    %6 = vector.shape_cast %5 : vector<1x24x1xf32> to vector<24x1xf32>
    %7 = vector.broadcast %6 : vector<24x1xf32> to vector<24x256xf32>
    %8 = arith.addf %4, %7 : vector<24x256xf32>
    %c0_8 = arith.constant 0 : index
    %c0_9 = arith.constant 0 : index
    %c0_10 = arith.constant 0 : index
    %9 = vector.load %arg7[%c0_8, %c0_9, %c0_10] : memref<1x24x256xf32, #tpu.memory_space<vmem>>, vector<1x24x256xf32>
    %10 = vector.shape_cast %9 : vector<1x24x256xf32> to vector<24x256xf32>
    %11 = vector.shape_cast %8 : vector<24x256xf32> to vector<1x24x256xf32>
    tpu.vector_store %arg7[%c0_8, %c0_9, %c0_10], %11 {strides = array<i32>} : memref<1x24x256xf32, #tpu.memory_space<vmem>>, vector<1x24x256xf32>,
    return
  }
  func.func @transform_0(%arg0: i32, %arg1: memref<4xi32, #tpu.memory_space<smem>>, %arg2: memref<4xi32, #tpu.memory_space<smem>>, %arg3: memref<4xi32, #tpu.memory_space<smem>>) -> (i32, i32, i32) {
    %0 = arith.index_cast %arg0 : i32 to index
    %1 = memref.load %arg2[%0] : memref<4xi32, #tpu.memory_space<smem>>
    %2 = arith.index_cast %arg0 : i32 to index
    %3 = memref.load %arg3[%2] : memref<4xi32, #tpu.memory_space<smem>>
    %c0_i32 = arith.constant 0 : i32
    %c0_i32_0 = arith.constant 0 : i32
    return %1, %c0_i32, %3 : i32, i32, i32
  }
  func.func @transform_1(%arg0: i32, %arg1: memref<4xi32, #tpu.memory_space<smem>>, %arg2: memref<4xi32, #tpu.memory_space<smem>>, %arg3: memref<4xi32, #tpu.memory_space<smem>>) -> (i32, i32, i32) {
    %0 = arith.index_cast %arg0 : i32 to index
    %1 = memref.load %arg1[%0] : memref<4xi32, #tpu.memory_space<smem>>
    %c0_i32 = arith.constant 0 : i32
    %c0_i32_0 = arith.constant 0 : i32
    %c0_i32_1 = arith.constant 0 : i32
    return %1, %c0_i32, %c0_i32_0 : i32, i32, i32
  }
  func.func @transform_2(%arg0: i32, %arg1: memref<4xi32, #tpu.memory_space<smem>>, %arg2: memref<4xi32, #tpu.memory_space<smem>>, %arg3: memref<4xi32, #tpu.memory_space<smem>>) -> (i32, i32, i32) {
    %0 = arith.index_cast %arg0 : i32 to index
    %1 = memref.load %arg1[%0] : memref<4xi32, #tpu.memory_space<smem>>
    %c0_i32 = arith.constant 0 : i32
    %c0_i32_0 = arith.constant 0 : i32
    %c0_i32_1 = arith.constant 0 : i32
    return %1, %c0_i32, %c0_i32_0 : i32, i32, i32
  }
  func.func @transform_3(%arg0: i32, %arg1: memref<4xi32, #tpu.memory_space<smem>>, %arg2: memref<4xi32, #tpu.memory_space<smem>>, %arg3: memref<4xi32, #tpu.memory_space<smem>>) -> (i32, i32, i32) {
    %0 = arith.index_cast %arg0 : i32 to index
    %1 = memref.load %arg2[%0] : memref<4xi32, #tpu.memory_space<smem>>
    %2 = arith.index_cast %arg0 : i32 to index
    %3 = memref.load %arg3[%2] : memref<4xi32, #tpu.memory_space<smem>>
    %c0_i32 = arith.constant 0 : i32
    %c0_i32_0 = arith.constant 0 : i32
    return %1, %c0_i32, %3 : i32, i32, i32
  }
}

module attributes {stable_mosaic.version = 11 : i64} {
  func.func @_fused_head_kernel(%arg0: i32, %arg1: memref<4xi32, #tpu.memory_space<smem>>, %arg2: memref<4xi32, #tpu.memory_space<smem>>, %arg3: memref<4xi32, #tpu.memory_space<smem>>, %arg4: memref<1x80x256xbf16, #tpu.memory_space<vmem>>, %arg5: memref<1x24x80xbf16, #tpu.memory_space<vmem>>, %arg6: memref<1x24x1xf32, #tpu.memory_space<vmem>>, %arg7: memref<1x24x256xf32, #tpu.memory_space<vmem>>) attributes {dimension_semantics = [#tpu.dimension_semantics<parallel>], iteration_bounds = array<i64: 4>, scalar_prefetch = 3 : i64, scratch_operands = 0 : i64, tpu.core_type = #tpu.core_type<tc>, window_params = [{transform_indices = @transform_0, window_bounds = array<i64: 1, 80, 256>}, {transform_indices = @transform_1, window_bounds = array<i64: 1, 24, 80>}, {transform_indices = @transform_2, window_bounds = array<i64: 1, 24, 1>}, {transform_indices = @transform_3, window_bounds = array<i64: 1, 24, 256>}]} {
    %c0 = arith.constant 0 : index
    %c0_0 = arith.constant 0 : index
    %c0_1 = arith.constant 0 : index
    %0 = vector.load %arg5[%c0, %c0_0, %c0_1] : memref<1x24x80xbf16, #tpu.memory_space<vmem>>, vector<1x24x80xbf16>
    %1 = vector.shape_cast %0 : vector<1x24x80xbf16> to vector<24x80xbf16>
    %c0_2 = arith.constant 0 : index
    %c0_3 = arith.constant 0 : index
    %c0_4 = arith.constant 0 : index
    %2 = vector.load %arg4[%c0_2, %c0_3, %c0_4] : memref<1x80x256xbf16, #tpu.memory_space<vmem>>, vector<1x80x256xbf16>
    %3 = vector.shape_cast %2 : vector<1x80x256xbf16> to vector<80x256xbf16>
    %cst = arith.constant dense<0.000000e+00> : vector<24x256xf32>
    %4 = tpu.matmul %1, %3, %cst {dimension_numbers = #tpu.dot_dimension_numbers<[1], [0], [0], [1], [0, 0, 1, 1], [], []>} : vector<24x80xbf16>, vector<80x256xbf16>, vector<24x256xf32> -> vector<24x256xf32>
    %c0_5 = arith.constant 0 : index
    %c0_6 = arith.constant 0 : index
    %c0_7 = arith.constant 0 : index
    %5 = vector.load %arg6[%c0_5, %c0_6, %c0_7] : memref<1x24x1xf32, #tpu.memory_space<vmem>>, vector<1x24x1xf32>
    %6 = vector.shape_cast %5 : vector<1x24x1xf32> to vector<24x1xf32>
    %7 = vector.broadcast %6 : vector<24x1xf32> to vector<24x256xf32>
    %8 = arith.addf %4, %7 : vector<24x256xf32>
    %c0_8 = arith.constant 0 : index
    %c0_9 = arith.constant 0 : index
    %c0_10 = arith.constant 0 : index
    %9 = vector.load %arg7[%c0_8, %c0_9, %c0_10] : memref<1x24x256xf32, #tpu.memory_space<vmem>>, vector<1x24x256xf32>
    %10 = vector.shape_cast %9 : vector<1x24x256xf32> to vector<24x256xf32>
    %11 = vector.shape_cast %8 : vector<24x256xf32> to vector<1x24x256xf32>
    tpu.vector_store %arg7[%c0_8, %c0_9, %c0_10], %11 {strides = array<i32>} : memref<1x24x256xf32, #tpu.memory_space<vmem>>, vector<1x24x256xf32>,
    return
  }
  func.func @transform_0(%arg0: i32, %arg1: memref<4xi32, #tpu.memory_space<smem>>, %arg2: memref<4xi32, #tpu.memory_space<smem>>, %arg3: memref<4xi32, #tpu.memory_space<smem>>) -> (i32, i32, i32) {
    %0 = arith.index_cast %arg0 : i32 to index
    %1 = memref.load %arg2[%0] : memref<4xi32, #tpu.memory_space<smem>>
    %2 = arith.index_cast %arg0 : i32 to index
    %3 = memref.load %arg3[%2] : memref<4xi32, #tpu.memory_space<smem>>
    %c0_i32 = arith.constant 0 : i32
    %c0_i32_0 = arith.constant 0 : i32
    return %1, %c0_i32, %3 : i32, i32, i32
  }
  func.func @transform_1(%arg0: i32, %arg1: memref<4xi32, #tpu.memory_space<smem>>, %arg2: memref<4xi32, #tpu.memory_space<smem>>, %arg3: memref<4xi32, #tpu.memory_space<smem>>) -> (i32, i32, i32) {
    %0 = arith.index_cast %arg0 : i32 to index
    %1 = memref.load %arg1[%0] : memref<4xi32, #tpu.memory_space<smem>>
    %c0_i32 = arith.constant 0 : i32
    %c0_i32_0 = arith.constant 0 : i32
    %c0_i32_1 = arith.constant 0 : i32
    return %1, %c0_i32, %c0_i32_0 : i32, i32, i32
  }
  func.func @transform_2(%arg0: i32, %arg1: memref<4xi32, #tpu.memory_space<smem>>, %arg2: memref<4xi32, #tpu.memory_space<smem>>, %arg3: memref<4xi32, #tpu.memory_space<smem>>) -> (i32, i32, i32) {
    %0 = arith.index_cast %arg0 : i32 to index
    %1 = memref.load %arg1[%0] : memref<4xi32, #tpu.memory_space<smem>>
    %c0_i32 = arith.constant 0 : i32
    %c0_i32_0 = arith.constant 0 : i32
    %c0_i32_1 = arith.constant 0 : i32
    return %1, %c0_i32, %c0_i32_0 : i32, i32, i32
  }
  func.func @transform_3(%arg0: i32, %arg1: memref<4xi32, #tpu.memory_space<smem>>, %arg2: memref<4xi32, #tpu.memory_space<smem>>, %arg3: memref<4xi32, #tpu.memory_space<smem>>) -> (i32, i32, i32) {
    %0 = arith.index_cast %arg0 : i32 to index
    %1 = memref.load %arg2[%0] : memref<4xi32, #tpu.memory_space<smem>>
    %2 = arith.index_cast %arg0 : i32 to index
    %3 = memref.load %arg3[%2] : memref<4xi32, #tpu.memory_space<smem>>
    %c0_i32 = arith.constant 0 : i32
    %c0_i32_0 = arith.constant 0 : i32
    return %1, %c0_i32, %3 : i32, i32, i32
  }
}

</mosaic_0001>

<bundles_post_ra>
// kernel: tpu_custom_call.1
= control target key start
LH: loop header
LB: loop body
LE: loop exit
PB: predicated region body
PF: predicated region fallthrough
CT: control target
= control target key end

     0   :  { %s1169_s0 = inlined_call_operand.vmem [shape: s32[4], index: 0, kind: input, shape index: {}]   ;;  %s1170_s3 = inlined_call_operand.hbm [shape: bf16[2,80,512], index: 3, kind: input, shape index: {}]   ;;  %s1171_s4 = inlined_call_operand.vmem [shape: bf16[2,24,80], index: 4, kind: input, shape index: {}]   ;;  %s1172_s5 = inlined_call_operand.vmem [shape: f32[2,24,1], index: 5, kind: input, shape index: {}]   ;;  %s1173_s6 = inlined_call_operand.hbm [shape: f32[2,24,512], index: 6, kind: output, shape index: {}]   ;;  %s1174_s1 = inlined_call_operand.vmem [shape: s32[4], index: 1, kind: input, shape index: {}]   ;;  %s1175_s2 = inlined_call_operand.vmem [shape: s32[4], index: 2, kind: input, shape index: {}]  }
   0x1   :  { %s11_s23 = sshll.u32 %s1169_s0, 4  ;;  %s15_s26 = sshll.u32 %s1174_s1, 4  ;;  %s12_s23 = int_to_ptr.vmem [resolvable:$true] %s11_s23  ;;  %s16_s26 = int_to_ptr.vmem [resolvable:$true] %s15_s26 }
   0x2   :  { %s717_s27 = scalar_lea.vmem %s12_s23, 16  ;;  %p722_p1 = scmp.lt.s32.totalorder %s12_s23, %s12_s23 }
   0x3   :  { %p718_p0 = scmp.ne.s32.totalorder %s12_s23, %s717_s27  ;;  %p723_p2 = scmp.lt.s32.totalorder %s717_s27, %s717_s27 }
   0x5   :  { %p724_p3 = por %p723_p2, %p722_p1 }
   0x7   :  { %p725_p4 = pnand %p724_p3, %p718_p0 }
   0x9   :  { %728 = shalt.err (!%p725_p4)  }
   0xa   :  { %s877_s28 = smov [#allocation3]   ;;  %s729_s29 = scalar_lea.vmem %s16_s26, 16 }
   0xb   :  { %14 = dma.vmem_to_smem %s12_s23, 16, %s877_s28, [#allocation2] }
   0xc   :  { %p730_p5 = scmp.ne.s32.totalorder %s16_s26, %s729_s29  ;;  %p734_p6 = scmp.lt.s32.totalorder %s16_s26, %s16_s26 }
   0xd   :  { %p735_p7 = scmp.lt.s32.totalorder %s729_s29, %s729_s29 }
   0xf   :  { %p736_p8 = por %p735_p7, %p734_p6 }
  0x11   :  { %p737_p9 = pnand %p736_p8, %p730_p5 }
  0x13   :  { %740 = shalt.err (!%p737_p9)  }
  0x14   :  { %s878_s0 = smov [#allocation4]   ;;  %s19_s7 = sshll.u32 %s1175_s2, 4  ;;  %s20_s7 = int_to_ptr.vmem [resolvable:$true] %s19_s7 }
  0x15   :  { %18 = dma.vmem_to_smem %s16_s26, 16, %s878_s0, [#allocation2] }
  0x16   :  { %s741_s8 = scalar_lea.vmem %s20_s7, 16  ;;  %p746_p11 = scmp.lt.s32.totalorder %s20_s7, %s20_s7 }
  0x17   :  { %p742_p10 = scmp.ne.s32.totalorder %s20_s7, %s741_s8  ;;  %p747_p12 = scmp.lt.s32.totalorder %s741_s8, %s741_s8 }
  0x19   :  { %p748_p13 = por %p747_p12, %p746_p11 }
  0x1b   :  { %p749_p0 = pnand %p748_p13, %p742_p10 }
  0x1d   :  { %752 = shalt.err (!%p749_p0)  }
  0x1e   :  { %s879_s9 = smov [#allocation5]  }
  0x1f   :  { %22 = dma.vmem_to_smem %s20_s7, 16, %s879_s9, [#allocation2] }
  0x20   :  { %839 = dma.done.wait [#allocation2], 48 }
  0x21   :  { %840 = vsyncadd [#allocation2], 4294967248 }
  0x22   :  { %24 = sfence }
  0x23   :  { %25 = vsyncpa [#allocation7], 0 }
  0x24   :  { %27 = vsyncpa [#allocation7 + $0x1], 0 }
  0x25   :  { %28 = vsyncpa [#allocation8], 0 }
  0x26   :  { %30 = vsyncpa [#allocation8 + $0x1], 0  ;;  %s933_s10 = smov 0   ;;  %s935_s2 = smov 0  }
  0x27   :  { %s937_s11 = smov 0   ;;  %s939_s12 = smov 0  }
  0x28   :  { %s941_s13 = smov 0   ;;  %s943_s14 = smov 0  }
  0x29   :  { %s945_s15 = smov 0  }
  0x2a LB: > { %1179 = sst [smem:[#allocation19_spill]] %s871_s14  ;;  %s967_s16 = sadd.s32 4294967295, %s875_s15   ;;  %s875_s15 = sphi %s945_s15, %s1199_s15   ;;  %s871_s14 = sphi %s943_s14, %s1193_s14   ;;  %s867_s13 = sphi %s941_s13, %s1198_s13   ;;  %s863_s12 = sphi %s939_s12, %s1197_s12   ;;  %s859_s11 = sphi %s937_s11, %s1196_s11   ;;  %s855_s2 = sphi %s935_s2, %s1195_s2   ;;  %s851_s10 = sphi %s933_s10, %s1194_s10  }
  0x2b   : > { %s563_s17 = sadd.s32 4294967294, %s875_s15   ;;  %s971_s18 = sadd.s32 1, %s875_s15  }
  0x2c   : > { %s40_s19 = sld [smem:[#allocation4 + %s875_s15]]  ;;  %s49_s23 = sadd.s32 1, %s871_s14 }
  0x2d   : > { %s41_s20 = sld [smem:[#allocation5 + %s875_s15]]  ;;  %p56_p1 = scmp.ne.s32.totalorder %s871_s14, %s867_s13 }
  0x2e   : > { %s42_s21 = sld [smem:[#allocation4 + %s971_s18]]  ;;  %p57_p2 = scmp.eq.s32.totalorder %s875_s15, 0 }
  0x2f   : > { %s43_s22 = sld [smem:[#allocation5 + %s971_s18]]  ;;  %p62_p3 = scmp.ne.s32.totalorder %s867_s13, %s863_s12 }
  0x30   : > { %p63_p4 = scmp.eq.s32.totalorder %s967_s16, 0  ;;  %p983_p5 = por %p57_p2, %p56_p1 }
  0x31   : > { %s128_s25 = sld [smem:[#allocation4 + %s875_s15]]  ;;  %s137_s7 = sadd.s32 1, %s859_s11 }
  0x32   : > { %p988_p6 = por %p63_p4, %p62_p3  ;;  %s129_s27 = sld [smem:[#allocation5 + %s875_s15]] }
  0x33   : > { %s130_s29 = sld [smem:[#allocation4 + %s971_s18]]  ;;  %p147_p8 = scmp.ne.s32.totalorder %s859_s11, %s855_s2 }
  0x34   : > { %s1181_s26 = scalar_select %p988_p6, 1, 0 }
  0x35   : > { %s44_s28 = ssub.s32 %s40_s19, %s42_s21  ;;  %s45_s0 = ssub.s32 %s41_s20, %s43_s22 }
  0x36   : > { %s131_s1 = sld [smem:[#allocation5 + %s971_s18]]  ;;  %s46_s30 = sor.u32 %s45_s0, %s44_s28 }
  0x37   : > { %p47_p7 = scmp.eq.s32.totalorder %s46_s30, 0  ;;  %p148_p9 = scmp.eq.s32.totalorder %s967_s16, 3 }
  0x38   : > { %p153_p10 = scmp.ne.s32.totalorder %s855_s2, %s851_s10  ;;  %p154_p12 = scmp.eq.s32.totalorder %s563_s17, 3 }
  0x39   : > { %s1002_s8 = scalar_select %p47_p7, %s871_s14, %s49_s23  }
  0x3a   : > { %s132_s9 = ssub.s32 %s128_s25, %s130_s29  ;;  %p1004_p11 = por %p148_p9, %p147_p8 }
  0x3b   : > { %1182 = sst [smem:[#allocation20_spill]] %s1002_s8  ;;  %p1010_p0 = por %p154_p12, %p153_p10 }
  0x3c   : > { %s1183_s12 = scalar_select %p1004_p11, 1, 0 }
  0x3d   : > { %s133_s19 = ssub.s32 %s129_s27, %s131_s1  ;;  %s194_s22 = sand.u32 1, %s871_s14  }
  0x3e   : > { %s134_s20 = sor.u32 %s133_s19, %s132_s9  ;;  %p630_p1 = scmp.lt.s32.totalorder %s875_s15, 4 }
  0x3f   : > { %p135_p13 = scmp.eq.s32.totalorder %s134_s20, 0  ;;  %s599_s28 = smul.u32 80, %s194_s22 }
  0x40   : > { %s1184_s21 = scalar_select %p1010_p0, 1, 0 }
  0x41   : > { %s1016_s23 = scalar_select %p135_p13, %s859_s11, %s137_s7  }
  0x42   : > { %s606_s25 = scalar_select %p983_p5, [#allocation4], [#allocation10] }
  0x43   : > { %1185 = sst [smem:[#allocation21_spill]] %s1016_s23  ;;  %p1023_p2 = pnand %p630_p1, %p983_p5 }
  0x44   : > { %s607_s17 = scalar_select %p983_p5, %s875_s15, 0 }
  0x45   : > { %s1201_s25 = smov (!%p630_p1, %s606_s25), [#allocation14]  ;;  %s198_s30 = scalar_lea.vmem [#allocation6], %s599_s28 }
  0x46   : > { %s1203_s17 = smov (!%p630_p1, %s607_s17), 0  ;;  %s209_s7 = sshll.u32 %s198_s30, 4  ;;  %s1038_s7 = int_to_ptr.vmem [resolvable:$true] %s209_s7 }
  0x47   : > { %s608_s29 = scalar_select %p983_p5, [#allocation5], [#allocation11] }
  0x48   : > { %s199_s0 = sld [smem:[%s1201_s25 + %s1203_s17]]  ;;  %p568_p3 = scmp.ge.s32.totalorder %s875_s15, 1 }
  0x49   : > { %s1205_s29 = smov (!%p630_p1, %s608_s29), [#allocation15]  ;;  %p217_p4 = scmp.lt.s32.totalorder %s875_s15, 5 }
  0x4a   : > { %s200_s1 = sld [smem:[%s1205_s29 + %s1203_s17]]  ;;  %s1045_s28 = scalar_lea.sflag [#allocation7], %s194_s22 }
  0x4b   : > { %p1034_p7 = pnand %p568_p3, %p217_p4  ;;  %p755_p8 = pneg %p1023_p2 }
  0x4c   : > { %s758_s14 = scalar_lea.hbm %s1170_s3, 5120 }
  0x4e   : > { %s600_s9 = smul.u32 40, %s199_s0 }
  0x50   : > { %s566_s20 = sshll.u32 %s200_s1, 1 }
  0x51   : > { %s206_s8 = sadd.s32 %s600_s9, %s566_s20 }
  0x52   : > { %s567_s24 = sshll.u32 %s206_s8, 6 }
  0x53   : > { %s1043_s23 = scalar_lea.hbm %s1170_s3, %s567_s24 }
  0x54   : > { %s753_s17 = scalar_lea.hbm %s1043_s23, 1280  ;;  %p759_p12 = scmp.lt.u32.totalorder %s1043_s23, %s1170_s3 }
  0x55   : > { %p754_p5 = scmp.ne.s32.totalorder %s1043_s23, %s753_s17  ;;  %p760_p13 = scmp.lt.u32.totalorder %s758_s14, %s753_s17 }
  0x56   : > { %p762_p3 = scmp.lt.u32.totalorder %s753_s17, %s1043_s23 }
  0x57   : > { %p756_p9 = pnand %p755_p8, %p754_p5  ;;  %p761_p1 = por %p760_p13, %p759_p12 }
  0x59   : > { %p757_p10 = pneg %p756_p9  ;;  %p763_p4 = por %p762_p3, %p761_p1 }
  0x5b   : > { %p764_p0 = pnand %p763_p4, %p757_p10 }
  0x5d   : > { %767 = shalt.err (!%p764_p0)
}
  0x5e   : > { %s768_s22 = scalar_lea.vmem %s1038_s7, 1280  ;;  %s880_s30 = smov [#allocation6]  }
  0x5f   : > { %p769_p5 = scmp.ne.s32.totalorder %s1038_s7, %s768_s22  ;;  %s773_s9 = sshll.u32 %s880_s30, 4  ;;  %s774_s9 = int_to_ptr.vmem [resolvable:$false] %s773_s9 }
  0x60   : > { %s775_s20 = scalar_lea.vmem %s774_s9, 2560  ;;  %p776_p6 = scmp.lt.s32.totalorder %s1038_s7, %s774_s9 }
  0x61   : > { %p771_p9 = pnand %p769_p5, %p755_p8  ;;  %p777_p12 = scmp.lt.s32.totalorder %s775_s20, %s768_s22 }
  0x63   : > { %p772_p11 = pneg %p771_p9  ;;  %p778_p13 = por %p777_p12, %p776_p6 }
  0x65   : > { %p779_p1 = pnand %p778_p13, %p772_p11 }
  0x67   : > { %782 = shalt.err (!%p779_p1)
}
  0x68   : > { %s881_s24 = smov 256   ;;  %s882_s25 = smov 128  }
  0x69   : > { %s883_s17 = smov 8   ;;  %221 = sbr.rel (%p1034_p7) target bundleno = 369 (0x171), region = 32 }
  0x6a   : > { %625 = dma.hbm_to_vmem [thread:$0]  (!%p1023_p2), %s1043_s23, 1280, %s1038_s7, %s1045_s28, %s881_s24, %s882_s25, %s883_s17  }
  0x6b   : > { %s223_s8 = sand.u32 (!%p1034_p7), 1, %s867_s13   ;;  %p1188_p6 = scmp.ne.s32.totalorder (!%p1034_p7), %s1181_s26, 0 }
  0x6c   : > { %s601_s29 = smul.u32 (!%p1034_p7), 80, %s223_s8  ;;  %s224_s14 = scalar_lea.sflag (!%p1034_p7), [#allocation7], %s223_s8 }
  0x6e   : > { %s1076_s0 = scalar_lea.vmem (!%p1034_p7), [#allocation6], %s601_s29 }
  0x70   : > { %842 = dma.done.wait (%p1188_p6), %s224_s14, 1280  }
  0x71   : > { %844 = vsyncadd (%p1188_p6), %s224_s14, 4294966016  ;;  %v884_v0 = vmov 0   ;;  %s265_s23 = sld [smem:[#allocation3 + %s967_s16]]  ;;  %v700_v1 = vld [vmem:[%s1076_s0 + $0x4] ss:$8 sps:$4 sm:$0xff]   ;;  %vm372_vm0 = vcmask 654336  }
  0x72   : > { %411 = vmatprep.mubr.bf16.mxu0 %v884_v0  ;;  %421 = vmatprep.mubr.bf16.mxu1 %v884_v0  ;;  %s272_s27 = sld [smem:[#allocation3 + %s967_s16]]  ;;  %v702_v2 = vld [vmem:[%s1076_s0] ss:$8 sps:$4 sm:$0xff]   ;;  %v703_v3 = vld [vmem:[%s1076_s0 + $0x14] ss:$8 sps:$4 sm:$0xff]   ;;  %p1189_p2 = scmp.ne.s32.totalorder %s1183_s12, 0 }
  0x73   : > { %698 = vset.pattern.permute.xlu0 %v884_v0  ;;  %699 = vset.pattern.permute.xlu1 %v884_v0  ;;  %v705_v4 = vld [vmem:[%s1076_s0 + $0x10] ss:$8 sps:$4 sm:$0xff]   ;;  %v706_v5 = vld [vmem:[%s1076_s0 + $0x24] ss:$8 sps:$4 sm:$0xff]   ;;  %v708_v6 = vld [vmem:[%s1076_s0 + $0x20] ss:$8 sps:$4 sm:$0xff]  }
  0x74   : > { %379 = vmatprep.subr.bf16.mxu0 %v700_v1  ;;  %589 = vmatprep.subr.bf16.mxu1 %v700_v1  ;;  %v709_v7 = vld [vmem:[%s1076_s0 + $0x34] ss:$8 sps:$4 sm:$0xff]   ;;  %v711_v11 = vld [vmem:[%s1076_s0 + $0x30] ss:$8 sps:$4 sm:$0xff]   ;;  %v712_v12 = vld [vmem:[%s1076_s0 + $0x44] ss:$8 sps:$4 sm:$0xff]  }
  0x75   : > { %380 = vmatpush1.bf16.msra.mxu0 %v702_v2  ;;  %594 = vmatpush1.bf16.msra.mxu1 %v702_v2  ;;  %v714_v13 = vld [vmem:[%s1076_s0 + $0x40] ss:$8 sps:$4 sm:$0xff]   ;;  %s612_s20 = scalar_select %p1189_p2, [#allocation4], [#allocation12] }
  0x76   : > { %381 = vmatprep.subr.bf16.mxu0 %v703_v3  ;;  %590 = vmatprep.subr.bf16.mxu1 %v703_v3  ;;  %s1211_s16 = smov (!%p1189_p2, %s967_s16), 0  ;;  %s259_s8 = sand.u32 1, %s855_s2  }
  0x77   : > { %p266_p11 = scmp.lt.s32.totalorder %s265_s23, 1  ;;  %s444_s25 = sld [smem:[%s612_s20 + %s1211_s16]] }
  0x78   : > { %p273_p0 = scmp.lt.s32.totalorder %s272_s27, 1  ;;  %s602_s29 = smul.u32 48, %s259_s8 }
  0x79   : > { %s1207_s23 = smov (!%p266_p11, %s265_s23), 1  ;;  %382 = vmatpush1.bf16.msra.mxu0 %v705_v4  ;;  %595 = vmatpush1.bf16.msra.mxu1 %v705_v4  ;;  %s885_s30 = smov [#allocation9]  }
  0x7a   : > { %s1209_s27 = smov (!%p273_p0, %s272_s27), 1  ;;  %s603_s26 = smul.u32 12, %s1207_s23  ;;  %383 = vmatprep.subr.bf16.mxu0 %v706_v5  ;;  %591 = vmatprep.subr.bf16.mxu1 %v706_v5 }
  0x7b   : > { %s604_s7 = smul.u32 24, %s1209_s27  ;;  %s261_s27 = scalar_lea.vmem [#allocation9], %s602_s29 }
  0x7c   : > { %s270_s1 = scalar_lea.vmem %s1171_s4, %s603_s26  ;;  %s454_s26 = sshll.u32 %s261_s27, 4  ;;  %s1110_s26 = int_to_ptr.vmem [resolvable:$true] %s454_s26 }
  0x7d   : > { %s277_s9 = scalar_lea.vmem %s1172_s5, %s604_s7  ;;  %384 = vmatpush1.bf16.msra.mxu0 %v708_v6  ;;  %596 = vmatpush1.bf16.msra.mxu1 %v708_v6  ;;  %v715_v14 = vld [vmem:[%s270_s1] sm:$0xff]   ;;  %v716_v15 = vld [vmem:[%s270_s1 + $0x8] ss:$0 sps:$4 sm:$0xff]   ;;  %s605_s14 = smul.u32 12, %s444_s25 }
  0x7e   : > { %v296_v8 = vld [vmem:[%s277_s9] sm:$0xff]  ;;  %v298_v9 = vld [vmem:[%s277_s9 + $0x10] sm:$0xff]  ;;  %v297_v10 = vld [vmem:[%s277_s9 + $0x8] sm:$0xff]  ;;  %385 = vmatprep.subr.bf16.mxu0 %v709_v7  ;;  %592 = vmatprep.subr.bf16.mxu1 %v709_v7  ;;  %s614_s24 = scalar_select %p1189_p2, [#allocation5], [#allocation13] }
  0x7f   : > { %301 = vperm.xlu0 %698, %v296_v8   ;;  %311 = vperm.xlu1 %699, %v298_v9   ;;  %s1119_s1 = scalar_lea.sflag [#allocation8], %s259_s8  ;;  %s783_s22 = scalar_lea.vmem %s1110_s26, 768 }
  0x80   : > { %s445_s17 = sld [smem:[%s614_s24 + %s1211_s16]]  ;;  %p784_p7 = scmp.ne.s32.totalorder %s1110_s26, %s783_s22 }
  0x81   : > { %386 = vmatpush1.bf16.msra.mxu0 %v711_v11  ;;  %597 = vmatpush1.bf16.msra.mxu1 %v711_v11  ;;  %s787_s9 = sshll.u32 %s885_s30, 4  ;;  %s788_s9 = int_to_ptr.vmem [resolvable:$false] %s787_s9 }
  0x82   : > { %387 = vmatprep.subr.bf16.mxu0 %v712_v12  ;;  %593 = vmatprep.subr.bf16.mxu1 %v712_v12  ;;  %p785_p8 = pnand %p784_p7, %p1189_p2  ;;  %s789_s20 = scalar_lea.vmem %s788_s9, 1536 }
  0x83   : > { %306 = vperm.xlu0 %698, %v297_v10   ;;  %p790_p3 = scmp.lt.s32.totalorder %s1110_s26, %s788_s9  ;;  %p791_p4 = scmp.lt.s32.totalorder %s789_s20, %s783_s22 }
  0x84   : > { %p786_p10 = pneg %p785_p8 }
  0x85   : > { %388 = vmatpush1.bf16.msra.mxu0 %v714_v13  ;;  %598 = vmatpush1.bf16.msra.mxu1 %v714_v13  ;;  %p792_p5 = por %p791_p4, %p790_p3 }
  0x86   : > { %s585_s0 = sshll.u32 %s445_s17, 1 }
  0x87   : > { %s451_s23 = sadd.s32 %s605_s14, %s585_s0  ;;  %p793_p9 = pnand %p792_p5, %p786_p10 }
  0x88   : > { %583 = vmatmul.mubr.msk.bf16.vlgmr.msra.gmra.mrb[0].mxu0 %vm372_vm0, %v715_v14  ;;  %584 = vmatmul.mubr.msk.bf16.vlgmr.msra.gmra.mrb[0].mxu1 %vm372_vm0, %v716_v15  ;;  %s586_s7 = sshll.u32 %s451_s23, 7 }
  0x89   : > { %s1115_s28 = scalar_lea.hbm %s1173_s6, %s586_s7 }
  0xfe   : > { %v302_v16 = vpop.permute.xlu0 %301  ;;  %v312_v17 = vpop.permute.xlu1 %311 }
 0x102   : > { %v307_v18 = vpop.permute.xlu0 %306 }
 0x15b   : > { %v413_v19 = vpop.f32.mrb[0].mxu0  ;;  %v423_v20 = vpop.f32.mrb[0].mxu1 }
 0x15c   : > { %v414_v21 = vadd.f32 %v413_v19, %v302_v16  ;;  %v415_v22 = vpop.f32.mrb[1].mxu0  ;;  %v425_v23 = vpop.f32.mrb[1].mxu1  ;;  %v424_v24 = vadd.f32 %v423_v20, %v312_v17 }
 0x15d   : > { %v416_v25 = vadd.f32 %v415_v22, %v302_v16  ;;  %v426_v26 = vadd.f32 %v425_v23, %v312_v17  ;;  %v417_v27 = vpop.f32.mrb[2].mxu0  ;;  %v427_v28 = vpop.f32.mrb[2].mxu1 }
 0x15e   : > { %430 = vst [vmem:[%s261_s27] sm:$0xff] %v414_v21  ;;  %434 = vst [vmem:[%s261_s27 + $0x20] sm:$0xff] %v424_v24  ;;  %v418_v29 = vadd.f32 %v417_v27, %v307_v18  ;;  %v419_v30 = vpop.f32.mrb[3].mxu0  ;;  %v428_v31 = vpop.f32.mrb[3].mxu1 }
 0x15f   : > { %431 = vst [vmem:[%s261_s27 + $0x8] sm:$0xff] %v416_v25  ;;  %435 = vst [vmem:[%s261_s27 + $0x28] sm:$0xff] %v426_v26  ;;  %v420_v32 = vadd.f32 %v419_v30, %v307_v18 }
 0x160   : > { %432 = vst [vmem:[%s261_s27 + $0x10] sm:$0xff] %v418_v29 }
 0x161   : > { %433 = vst [vmem:[%s261_s27 + $0x18] sm:$0xff] %v420_v32 }
 0x162   : > { %796 = shalt.err (!%p793_p9)
}
 0x163   : > { %s797_s24 = scalar_lea.hbm %s1115_s28, 768  ;;  %s801_s8 = scalar_lea.hbm %s1173_s6, 3072 }
 0x164   : > { %p798_p12 = scmp.ne.s32.totalorder %s1115_s28, %s797_s24  ;;  %p802_p6 = scmp.lt.u32.totalorder %s1115_s28, %s1173_s6 }
 0x165   : > { %p803_p11 = scmp.lt.u32.totalorder %s801_s8, %s797_s24  ;;  %p805_p7 = scmp.lt.u32.totalorder %s797_s24, %s1115_s28 }
 0x166   : > { %p799_p13 = pnand %p798_p12, %p1189_p2 }
 0x167   : > { %p804_p0 = por %p803_p11, %p802_p6 }
 0x168   : > { %p800_p1 = pneg %p799_p13 }
 0x169   : > { %p806_p8 = por %p805_p7, %p804_p0 }
 0x16b   : > { %p807_p10 = pnand %p806_p8, %p800_p1 }
 0x16d   : > { %810 = shalt.err (!%p807_p10)
}
 0x16e   : > { %s886_s0 = smov 256   ;;  %s887_s23 = smov 512  }
 0x16f   : > { %s888_s27 = smov 16  }
 0x170   : > { %616 = dma.vmem_to_hbm [thread:$0]  (%p1189_p2), %s1110_s26, 768, %s1115_s28, %s1119_s1, %s886_s0, %s887_s23, %s888_s27  }
 0x171 PF: > { %p631_p3 = scmp.ge.s32.totalorder %s875_s15, 2  ;;  %s469_s7 = sand.u32 1, %s851_s10  }
 0x172   : > { %p1190_p4 = scmp.ne.s32.totalorder %s1184_s21, 0  ;;  %s470_s16 = scalar_lea.sflag [#allocation8], %s469_s7 }
 0x174   : > { %p627_p5 = pnand %p631_p3, %p1190_p4 }
 0x176   : > { %846 = dma.done.wait (!%p627_p5), %s470_s16, 768  }
 0x177   : > { %848 = vsyncadd (!%p627_p5), %s470_s16, 4294966528  ;;  %s1191_s19 = sld [smem:[#allocation21_spill]]  ;;  %s1192_s22 = sld [smem:[#allocation19_spill]] }
 0x178   : > { %s1193_s14 = sld [smem:[#allocation20_spill]]  ;;  %p33_p2 = scmp.ge.s32.totalorder %s971_s18, 6  }
 0x179   : > { %s1194_s10 = smov %s855_s2  ;;  %s1195_s2 = smov %s859_s11 }
 0x17a   : > { %s1197_s12 = smov %s867_s13  ;;  %s1199_s15 = smov %s971_s18 }
 0x17b   :  { %35 = sbr.rel (!%p33_p2) target bundleno = 42 (0x2a), region = 83 }
 0x17d   : > { %s1196_s11 = smov %s1191_s19  ;;  %s1198_s13 = smov %s1192_s22 }
 0x182   :  { %475 = vsyncpa [#allocation7], 1 }
 0x183   :  { %477 = vsyncpa [#allocation7 + $0x1], 1 }
 0x184   :  { %478 = vsyncpa [#allocation8], 1 }
 0x185   :  { %480 = vsyncpa [#allocation8 + $0x1], 1 }

// kernel: tpu_custom_call.1
= control target key start
LH: loop header
LB: loop body
LE: loop exit
PB: predicated region body
PF: predicated region fallthrough
CT: control target
= control target key end

     0   :  { %s1163_s0 = inlined_call_operand.vmem [shape: s32[4], index: 0, kind: input, shape index: {}]   ;;  %s1164_s3 = inlined_call_operand.hbm [shape: bf16[2,80,512], index: 3, kind: input, shape index: {}]   ;;  %s1165_s4 = inlined_call_operand.vmem [shape: bf16[2,24,80], index: 4, kind: input, shape index: {}]   ;;  %s1166_s5 = inlined_call_operand.vmem [shape: f32[2,24,1], index: 5, kind: input, shape index: {}]   ;;  %s1167_s6 = inlined_call_operand.hbm [shape: f32[2,24,512], index: 6, kind: output, shape index: {}]   ;;  %s1168_s1 = inlined_call_operand.vmem [shape: s32[4], index: 1, kind: input, shape index: {}]   ;;  %s1169_s2 = inlined_call_operand.vmem [shape: s32[4], index: 2, kind: input, shape index: {}]  }
   0x1   :  { %s11_s23 = sshll.u32 %s1163_s0, 4  ;;  %s15_s26 = sshll.u32 %s1168_s1, 4  ;;  %s12_s23 = int_to_ptr.vmem [resolvable:$true] %s11_s23  ;;  %s16_s26 = int_to_ptr.vmem [resolvable:$true] %s15_s26 }
   0x2   :  { %s711_s27 = scalar_lea.vmem %s12_s23, 16  ;;  %p716_p1 = scmp.lt.s32.totalorder %s12_s23, %s12_s23 }
   0x3   :  { %p712_p0 = scmp.ne.s32.totalorder %s12_s23, %s711_s27  ;;  %p717_p2 = scmp.lt.s32.totalorder %s711_s27, %s711_s27 }
   0x5   :  { %p718_p3 = por %p717_p2, %p716_p1 }
   0x7   :  { %p719_p4 = pnand %p718_p3, %p712_p0 }
   0x9   :  { %722 = shalt.err (!%p719_p4)  }
   0xa   :  { %s871_s28 = smov [#allocation3]   ;;  %s723_s29 = scalar_lea.vmem %s16_s26, 16 }
   0xb   :  { %14 = dma.vmem_to_smem %s12_s23, 16, %s871_s28, [#allocation2] }
   0xc   :  { %p724_p5 = scmp.ne.s32.totalorder %s16_s26, %s723_s29  ;;  %p728_p6 = scmp.lt.s32.totalorder %s16_s26, %s16_s26 }
   0xd   :  { %p729_p7 = scmp.lt.s32.totalorder %s723_s29, %s723_s29 }
   0xf   :  { %p730_p8 = por %p729_p7, %p728_p6 }
  0x11   :  { %p731_p9 = pnand %p730_p8, %p724_p5 }
  0x13   :  { %734 = shalt.err (!%p731_p9)  }
  0x14   :  { %s872_s0 = smov [#allocation4]   ;;  %s19_s7 = sshll.u32 %s1169_s2, 4  ;;  %s20_s7 = int_to_ptr.vmem [resolvable:$true] %s19_s7 }
  0x15   :  { %18 = dma.vmem_to_smem %s16_s26, 16, %s872_s0, [#allocation2] }
  0x16   :  { %s735_s8 = scalar_lea.vmem %s20_s7, 16  ;;  %p740_p11 = scmp.lt.s32.totalorder %s20_s7, %s20_s7 }
  0x17   :  { %p736_p10 = scmp.ne.s32.totalorder %s20_s7, %s735_s8  ;;  %p741_p12 = scmp.lt.s32.totalorder %s735_s8, %s735_s8 }
  0x19   :  { %p742_p13 = por %p741_p12, %p740_p11 }
  0x1b   :  { %p743_p0 = pnand %p742_p13, %p736_p10 }
  0x1d   :  { %746 = shalt.err (!%p743_p0)  }
  0x1e   :  { %s873_s9 = smov [#allocation5]  }
  0x1f   :  { %22 = dma.vmem_to_smem %s20_s7, 16, %s873_s9, [#allocation2] }
  0x20   :  { %833 = dma.done.wait [#allocation2], 48 }
  0x21   :  { %834 = vsyncadd [#allocation2], 4294967248 }
  0x22   :  { %24 = sfence }
  0x23   :  { %25 = vsyncpa [#allocation7], 0 }
  0x24   :  { %27 = vsyncpa [#allocation7 + $0x1], 0 }
  0x25   :  { %28 = vsyncpa [#allocation8], 0 }
  0x26   :  { %30 = vsyncpa [#allocation8 + $0x1], 0  ;;  %s927_s10 = smov 0   ;;  %s929_s2 = smov 0  }
  0x27   :  { %s931_s11 = smov 0   ;;  %s933_s12 = smov 0  }
  0x28   :  { %s935_s13 = smov 0   ;;  %s937_s14 = smov 0  }
  0x29   :  { %s939_s15 = smov 0  }
  0x2a LB: > { %1173 = sst [smem:[#allocation19_spill]] %s865_s14  ;;  %s961_s16 = sadd.s32 4294967295, %s869_s15   ;;  %s869_s15 = sphi %s939_s15, %s1193_s15   ;;  %s865_s14 = sphi %s937_s14, %s1187_s14   ;;  %s861_s13 = sphi %s935_s13, %s1192_s13   ;;  %s857_s12 = sphi %s933_s12, %s1191_s12   ;;  %s853_s11 = sphi %s931_s11, %s1190_s11   ;;  %s849_s2 = sphi %s929_s2, %s1189_s2   ;;  %s845_s10 = sphi %s927_s10, %s1188_s10  }
  0x2b   : > { %s557_s17 = sadd.s32 4294967294, %s869_s15   ;;  %s965_s18 = sadd.s32 1, %s869_s15  }
  0x2c   : > { %s40_s19 = sld [smem:[#allocation4 + %s869_s15]]  ;;  %s49_s23 = sadd.s32 1, %s865_s14 }
  0x2d   : > { %s41_s20 = sld [smem:[#allocation5 + %s869_s15]]  ;;  %p56_p1 = scmp.ne.s32.totalorder %s865_s14, %s861_s13 }
  0x2e   : > { %s42_s21 = sld [smem:[#allocation4 + %s965_s18]]  ;;  %p57_p2 = scmp.eq.s32.totalorder %s869_s15, 0 }
  0x2f   : > { %s43_s22 = sld [smem:[#allocation5 + %s965_s18]]  ;;  %p62_p3 = scmp.ne.s32.totalorder %s861_s13, %s857_s12 }
  0x30   : > { %p63_p4 = scmp.eq.s32.totalorder %s961_s16, 0  ;;  %p977_p5 = por %p57_p2, %p56_p1 }
  0x31   : > { %s128_s25 = sld [smem:[#allocation4 + %s869_s15]]  ;;  %s137_s7 = sadd.s32 1, %s853_s11 }
  0x32   : > { %p982_p6 = por %p63_p4, %p62_p3  ;;  %s129_s27 = sld [smem:[#allocation5 + %s869_s15]] }
  0x33   : > { %s130_s29 = sld [smem:[#allocation4 + %s965_s18]]  ;;  %p147_p8 = scmp.ne.s32.totalorder %s853_s11, %s849_s2 }
  0x34   : > { %s1175_s26 = scalar_select %p982_p6, 1, 0 }
  0x35   : > { %s44_s28 = ssub.s32 %s40_s19, %s42_s21  ;;  %s45_s0 = ssub.s32 %s41_s20, %s43_s22 }
  0x36   : > { %s131_s1 = sld [smem:[#allocation5 + %s965_s18]]  ;;  %s46_s30 = sor.u32 %s45_s0, %s44_s28 }
  0x37   : > { %p47_p7 = scmp.eq.s32.totalorder %s46_s30, 0  ;;  %p148_p9 = scmp.eq.s32.totalorder %s961_s16, 3 }
  0x38   : > { %p153_p10 = scmp.ne.s32.totalorder %s849_s2, %s845_s10  ;;  %p154_p12 = scmp.eq.s32.totalorder %s557_s17, 3 }
  0x39   : > { %s996_s8 = scalar_select %p47_p7, %s865_s14, %s49_s23  }
  0x3a   : > { %s132_s9 = ssub.s32 %s128_s25, %s130_s29  ;;  %p998_p11 = por %p148_p9, %p147_p8 }
  0x3b   : > { %1176 = sst [smem:[#allocation20_spill]] %s996_s8  ;;  %p1004_p0 = por %p154_p12, %p153_p10 }
  0x3c   : > { %s1177_s12 = scalar_select %p998_p11, 1, 0 }
  0x3d   : > { %s133_s19 = ssub.s32 %s129_s27, %s131_s1  ;;  %s174_s22 = sand.u32 1, %s865_s14  }
  0x3e   : > { %s134_s20 = sor.u32 %s133_s19, %s132_s9  ;;  %p624_p1 = scmp.lt.s32.totalorder %s869_s15, 4 }
  0x3f   : > { %p135_p13 = scmp.eq.s32.totalorder %s134_s20, 0  ;;  %s593_s28 = smul.u32 80, %s174_s22 }
  0x40   : > { %s1178_s21 = scalar_select %p1004_p0, 1, 0 }
  0x41   : > { %s1010_s23 = scalar_select %p135_p13, %s853_s11, %s137_s7  }
  0x42   : > { %s600_s25 = scalar_select %p977_p5, [#allocation4], [#allocation10] }
  0x43   : > { %1179 = sst [smem:[#allocation21_spill]] %s1010_s23  ;;  %p1017_p2 = pnand %p624_p1, %p977_p5 }
  0x44   : > { %s601_s17 = scalar_select %p977_p5, %s869_s15, 0 }
  0x45   : > { %s1195_s25 = smov (!%p624_p1, %s600_s25), [#allocation14]  ;;  %s178_s30 = scalar_lea.vmem [#allocation6], %s593_s28 }
  0x46   : > { %s1197_s17 = smov (!%p624_p1, %s601_s17), 0  ;;  %s189_s7 = sshll.u32 %s178_s30, 4  ;;  %s1032_s7 = int_to_ptr.vmem [resolvable:$true] %s189_s7 }
  0x47   : > { %s602_s29 = scalar_select %p977_p5, [#allocation5], [#allocation11] }
  0x48   : > { %s179_s0 = sld [smem:[%s1195_s25 + %s1197_s17]]  ;;  %p562_p3 = scmp.ge.s32.totalorder %s869_s15, 1 }
  0x49   : > { %s1199_s29 = smov (!%p624_p1, %s602_s29), [#allocation15]  ;;  %p217_p4 = scmp.lt.s32.totalorder %s869_s15, 5 }
  0x4a   : > { %s180_s1 = sld [smem:[%s1199_s29 + %s1197_s17]]  ;;  %s1039_s28 = scalar_lea.sflag [#allocation7], %s174_s22 }
  0x4b   : > { %p1028_p7 = pnand %p562_p3, %p217_p4  ;;  %p749_p8 = pneg %p1017_p2 }
  0x4c   : > { %s752_s14 = scalar_lea.hbm %s1164_s3, 5120 }
  0x4e   : > { %s594_s9 = smul.u32 40, %s179_s0 }
  0x50   : > { %s560_s20 = sshll.u32 %s180_s1, 1 }
  0x51   : > { %s186_s8 = sadd.s32 %s594_s9, %s560_s20 }
  0x52   : > { %s561_s24 = sshll.u32 %s186_s8, 6 }
  0x53   : > { %s1037_s23 = scalar_lea.hbm %s1164_s3, %s561_s24 }
  0x54   : > { %s747_s17 = scalar_lea.hbm %s1037_s23, 1280  ;;  %p753_p12 = scmp.lt.u32.totalorder %s1037_s23, %s1164_s3 }
  0x55   : > { %p748_p5 = scmp.ne.s32.totalorder %s1037_s23, %s747_s17  ;;  %p754_p13 = scmp.lt.u32.totalorder %s752_s14, %s747_s17 }
  0x56   : > { %p756_p3 = scmp.lt.u32.totalorder %s747_s17, %s1037_s23 }
  0x57   : > { %p750_p9 = pnand %p749_p8, %p748_p5  ;;  %p755_p1 = por %p754_p13, %p753_p12 }
  0x59   : > { %p751_p10 = pneg %p750_p9  ;;  %p757_p4 = por %p756_p3, %p755_p1 }
  0x5b   : > { %p758_p0 = pnand %p757_p4, %p751_p10 }
  0x5d   : > { %761 = shalt.err (!%p758_p0)
}
  0x5e   : > { %s762_s22 = scalar_lea.vmem %s1032_s7, 1280  ;;  %s874_s30 = smov [#allocation6]  }
  0x5f   : > { %p763_p5 = scmp.ne.s32.totalorder %s1032_s7, %s762_s22  ;;  %s767_s9 = sshll.u32 %s874_s30, 4  ;;  %s768_s9 = int_to_ptr.vmem [resolvable:$false] %s767_s9 }
  0x60   : > { %s769_s20 = scalar_lea.vmem %s768_s9, 2560  ;;  %p770_p6 = scmp.lt.s32.totalorder %s1032_s7, %s768_s9 }
  0x61   : > { %p765_p9 = pnand %p763_p5, %p749_p8  ;;  %p771_p12 = scmp.lt.s32.totalorder %s769_s20, %s762_s22 }
  0x63   : > { %p766_p11 = pneg %p765_p9  ;;  %p772_p13 = por %p771_p12, %p770_p6 }
  0x65   : > { %p773_p1 = pnand %p772_p13, %p766_p11 }
  0x67   : > { %776 = shalt.err (!%p773_p1)
}
  0x68   : > { %s875_s24 = smov 256   ;;  %s876_s25 = smov 128  }
  0x69   : > { %s877_s17 = smov 8   ;;  %221 = sbr.rel (%p1028_p7) target bundleno = 369 (0x171), region = 32 }
  0x6a   : > { %619 = dma.hbm_to_vmem [thread:$0]  (!%p1017_p2), %s1037_s23, 1280, %s1032_s7, %s1039_s28, %s875_s24, %s876_s25, %s877_s17  }
  0x6b   : > { %s223_s8 = sand.u32 (!%p1028_p7), 1, %s861_s13   ;;  %p1182_p6 = scmp.ne.s32.totalorder (!%p1028_p7), %s1175_s26, 0 }
  0x6c   : > { %s595_s29 = smul.u32 (!%p1028_p7), 80, %s223_s8  ;;  %s224_s14 = scalar_lea.sflag (!%p1028_p7), [#allocation7], %s223_s8 }
  0x6e   : > { %s1070_s0 = scalar_lea.vmem (!%p1028_p7), [#allocation6], %s595_s29 }
  0x70   : > { %836 = dma.done.wait (%p1182_p6), %s224_s14, 1280  }
  0x71   : > { %838 = vsyncadd (%p1182_p6), %s224_s14, 4294966016  ;;  %v878_v0 = vmov 0   ;;  %s265_s23 = sld [smem:[#allocation3 + %s961_s16]]  ;;  %v694_v1 = vld [vmem:[%s1070_s0 + $0x4] ss:$8 sps:$4 sm:$0xff]   ;;  %vm372_vm0 = vcmask 654336  }
  0x72   : > { %411 = vmatprep.mubr.bf16.mxu0 %v878_v0  ;;  %421 = vmatprep.mubr.bf16.mxu1 %v878_v0  ;;  %s272_s27 = sld [smem:[#allocation3 + %s961_s16]]  ;;  %v696_v2 = vld [vmem:[%s1070_s0] ss:$8 sps:$4 sm:$0xff]   ;;  %v697_v3 = vld [vmem:[%s1070_s0 + $0x14] ss:$8 sps:$4 sm:$0xff]   ;;  %p1183_p2 = scmp.ne.s32.totalorder %s1177_s12, 0 }
  0x73   : > { %692 = vset.pattern.permute.xlu0 %v878_v0  ;;  %693 = vset.pattern.permute.xlu1 %v878_v0  ;;  %v699_v4 = vld [vmem:[%s1070_s0 + $0x10] ss:$8 sps:$4 sm:$0xff]   ;;  %v700_v5 = vld [vmem:[%s1070_s0 + $0x24] ss:$8 sps:$4 sm:$0xff]   ;;  %v702_v6 = vld [vmem:[%s1070_s0 + $0x20] ss:$8 sps:$4 sm:$0xff]  }
  0x74   : > { %379 = vmatprep.subr.bf16.mxu0 %v694_v1  ;;  %583 = vmatprep.subr.bf16.mxu1 %v694_v1  ;;  %v703_v7 = vld [vmem:[%s1070_s0 + $0x34] ss:$8 sps:$4 sm:$0xff]   ;;  %v705_v11 = vld [vmem:[%s1070_s0 + $0x30] ss:$8 sps:$4 sm:$0xff]   ;;  %v706_v12 = vld [vmem:[%s1070_s0 + $0x44] ss:$8 sps:$4 sm:$0xff]  }
  0x75   : > { %380 = vmatpush1.bf16.msra.mxu0 %v696_v2  ;;  %588 = vmatpush1.bf16.msra.mxu1 %v696_v2  ;;  %v708_v13 = vld [vmem:[%s1070_s0 + $0x40] ss:$8 sps:$4 sm:$0xff]   ;;  %s606_s20 = scalar_select %p1183_p2, [#allocation4], [#allocation12] }
  0x76   : > { %381 = vmatprep.subr.bf16.mxu0 %v697_v3  ;;  %584 = vmatprep.subr.bf16.mxu1 %v697_v3  ;;  %s1205_s16 = smov (!%p1183_p2, %s961_s16), 0  ;;  %s259_s8 = sand.u32 1, %s849_s2  }
  0x77   : > { %p266_p11 = scmp.lt.s32.totalorder %s265_s23, 1  ;;  %s444_s25 = sld [smem:[%s606_s20 + %s1205_s16]] }
  0x78   : > { %p273_p0 = scmp.lt.s32.totalorder %s272_s27, 1  ;;  %s596_s29 = smul.u32 48, %s259_s8 }
  0x79   : > { %s1201_s23 = smov (!%p266_p11, %s265_s23), 1  ;;  %382 = vmatpush1.bf16.msra.mxu0 %v699_v4  ;;  %589 = vmatpush1.bf16.msra.mxu1 %v699_v4  ;;  %s879_s30 = smov [#allocation9]  }
  0x7a   : > { %s1203_s27 = smov (!%p273_p0, %s272_s27), 1  ;;  %s597_s26 = smul.u32 12, %s1201_s23  ;;  %383 = vmatprep.subr.bf16.mxu0 %v700_v5  ;;  %585 = vmatprep.subr.bf16.mxu1 %v700_v5 }
  0x7b   : > { %s598_s7 = smul.u32 24, %s1203_s27  ;;  %s261_s27 = scalar_lea.vmem [#allocation9], %s596_s29 }
  0x7c   : > { %s270_s1 = scalar_lea.vmem %s1165_s4, %s597_s26  ;;  %s454_s26 = sshll.u32 %s261_s27, 4  ;;  %s1104_s26 = int_to_ptr.vmem [resolvable:$true] %s454_s26 }
  0x7d   : > { %s277_s9 = scalar_lea.vmem %s1166_s5, %s598_s7  ;;  %384 = vmatpush1.bf16.msra.mxu0 %v702_v6  ;;  %590 = vmatpush1.bf16.msra.mxu1 %v702_v6  ;;  %v709_v14 = vld [vmem:[%s270_s1] sm:$0xff]   ;;  %v710_v15 = vld [vmem:[%s270_s1 + $0x8] ss:$0 sps:$4 sm:$0xff]   ;;  %s599_s14 = smul.u32 12, %s444_s25 }
  0x7e   : > { %v296_v8 = vld [vmem:[%s277_s9] sm:$0xff]  ;;  %v298_v9 = vld [vmem:[%s277_s9 + $0x10] sm:$0xff]  ;;  %v297_v10 = vld [vmem:[%s277_s9 + $0x8] sm:$0xff]  ;;  %385 = vmatprep.subr.bf16.mxu0 %v703_v7  ;;  %586 = vmatprep.subr.bf16.mxu1 %v703_v7  ;;  %s608_s24 = scalar_select %p1183_p2, [#allocation5], [#allocation13] }
  0x7f   : > { %301 = vperm.xlu0 %692, %v296_v8   ;;  %311 = vperm.xlu1 %693, %v298_v9   ;;  %s1113_s1 = scalar_lea.sflag [#allocation8], %s259_s8  ;;  %s777_s22 = scalar_lea.vmem %s1104_s26, 768 }
  0x80   : > { %s445_s17 = sld [smem:[%s608_s24 + %s1205_s16]]  ;;  %p778_p7 = scmp.ne.s32.totalorder %s1104_s26, %s777_s22 }
  0x81   : > { %386 = vmatpush1.bf16.msra.mxu0 %v705_v11  ;;  %591 = vmatpush1.bf16.msra.mxu1 %v705_v11  ;;  %s781_s9 = sshll.u32 %s879_s30, 4  ;;  %s782_s9 = int_to_ptr.vmem [resolvable:$false] %s781_s9 }
  0x82   : > { %387 = vmatprep.subr.bf16.mxu0 %v706_v12  ;;  %587 = vmatprep.subr.bf16.mxu1 %v706_v12  ;;  %p779_p8 = pnand %p778_p7, %p1183_p2  ;;  %s783_s20 = scalar_lea.vmem %s782_s9, 1536 }
  0x83   : > { %306 = vperm.xlu0 %692, %v297_v10   ;;  %p784_p3 = scmp.lt.s32.totalorder %s1104_s26, %s782_s9  ;;  %p785_p4 = scmp.lt.s32.totalorder %s783_s20, %s777_s22 }
  0x84   : > { %p780_p10 = pneg %p779_p8 }
  0x85   : > { %388 = vmatpush1.bf16.msra.mxu0 %v708_v13  ;;  %592 = vmatpush1.bf16.msra.mxu1 %v708_v13  ;;  %p786_p5 = por %p785_p4, %p784_p3 }
  0x86   : > { %s579_s0 = sshll.u32 %s445_s17, 1 }
  0x87   : > { %s451_s23 = sadd.s32 %s599_s14, %s579_s0  ;;  %p787_p9 = pnand %p786_p5, %p780_p10 }
  0x88   : > { %577 = vmatmul.mubr.msk.bf16.vlgmr.msra.gmra.mrb[0].mxu0 %vm372_vm0, %v709_v14  ;;  %578 = vmatmul.mubr.msk.bf16.vlgmr.msra.gmra.mrb[0].mxu1 %vm372_vm0, %v710_v15  ;;  %s580_s7 = sshll.u32 %s451_s23, 7 }
  0x89   : > { %s1109_s28 = scalar_lea.hbm %s1167_s6, %s580_s7 }
  0xfe   : > { %v302_v16 = vpop.permute.xlu0 %301  ;;  %v312_v17 = vpop.permute.xlu1 %311 }
 0x102   : > { %v307_v18 = vpop.permute.xlu0 %306 }
 0x15b   : > { %v413_v19 = vpop.f32.mrb[0].mxu0  ;;  %v423_v20 = vpop.f32.mrb[0].mxu1 }
 0x15c   : > { %v414_v21 = vadd.f32 %v413_v19, %v302_v16  ;;  %v415_v22 = vpop.f32.mrb[1].mxu0  ;;  %v425_v23 = vpop.f32.mrb[1].mxu1  ;;  %v424_v24 = vadd.f32 %v423_v20, %v312_v17 }
 0x15d   : > { %v416_v25 = vadd.f32 %v415_v22, %v302_v16  ;;  %v426_v26 = vadd.f32 %v425_v23, %v312_v17  ;;  %v417_v27 = vpop.f32.mrb[2].mxu0  ;;  %v427_v28 = vpop.f32.mrb[2].mxu1 }
 0x15e   : > { %430 = vst [vmem:[%s261_s27] sm:$0xff] %v414_v21  ;;  %434 = vst [vmem:[%s261_s27 + $0x20] sm:$0xff] %v424_v24  ;;  %v418_v29 = vadd.f32 %v417_v27, %v307_v18  ;;  %v419_v30 = vpop.f32.mrb[3].mxu0  ;;  %v428_v31 = vpop.f32.mrb[3].mxu1 }
 0x15f   : > { %431 = vst [vmem:[%s261_s27 + $0x8] sm:$0xff] %v416_v25  ;;  %435 = vst [vmem:[%s261_s27 + $0x28] sm:$0xff] %v426_v26  ;;  %v420_v32 = vadd.f32 %v419_v30, %v307_v18 }
 0x160   : > { %432 = vst [vmem:[%s261_s27 + $0x10] sm:$0xff] %v418_v29 }
 0x161   : > { %433 = vst [vmem:[%s261_s27 + $0x18] sm:$0xff] %v420_v32 }
 0x162   : > { %790 = shalt.err (!%p787_p9)
}
 0x163   : > { %s791_s24 = scalar_lea.hbm %s1109_s28, 768  ;;  %s795_s8 = scalar_lea.hbm %s1167_s6, 3072 }
 0x164   : > { %p792_p12 = scmp.ne.s32.totalorder %s1109_s28, %s791_s24  ;;  %p796_p6 = scmp.lt.u32.totalorder %s1109_s28, %s1167_s6 }
 0x165   : > { %p797_p11 = scmp.lt.u32.totalorder %s795_s8, %s791_s24  ;;  %p799_p7 = scmp.lt.u32.totalorder %s791_s24, %s1109_s28 }
 0x166   : > { %p793_p13 = pnand %p792_p12, %p1183_p2 }
 0x167   : > { %p798_p0 = por %p797_p11, %p796_p6 }
 0x168   : > { %p794_p1 = pneg %p793_p13 }
 0x169   : > { %p800_p8 = por %p799_p7, %p798_p0 }
 0x16b   : > { %p801_p10 = pnand %p800_p8, %p794_p1 }
 0x16d   : > { %804 = shalt.err (!%p801_p10)
}
 0x16e   : > { %s880_s0 = smov 256   ;;  %s881_s23 = smov 512  }
 0x16f   : > { %s882_s27 = smov 16  }
 0x170   : > { %610 = dma.vmem_to_hbm [thread:$0]  (%p1183_p2), %s1104_s26, 768, %s1109_s28, %s1113_s1, %s880_s0, %s881_s23, %s882_s27  }
 0x171 PF: > { %p625_p3 = scmp.ge.s32.totalorder %s869_s15, 2  ;;  %s469_s7 = sand.u32 1, %s845_s10  }
 0x172   : > { %p1184_p4 = scmp.ne.s32.totalorder %s1178_s21, 0  ;;  %s470_s16 = scalar_lea.sflag [#allocation8], %s469_s7 }
 0x174   : > { %p621_p5 = pnand %p625_p3, %p1184_p4 }
 0x176   : > { %840 = dma.done.wait (!%p621_p5), %s470_s16, 768  }
 0x177   : > { %842 = vsyncadd (!%p621_p5), %s470_s16, 4294966528  ;;  %s1185_s19 = sld [smem:[#allocation21_spill]]  ;;  %s1186_s22 = sld [smem:[#allocation19_spill]] }
 0x178   : > { %s1187_s14 = sld [smem:[#allocation20_spill]]  ;;  %p33_p2 = scmp.ge.s32.totalorder %s965_s18, 6  }
 0x179   : > { %s1188_s10 = smov %s849_s2  ;;  %s1189_s2 = smov %s853_s11 }
 0x17a   : > { %s1191_s12 = smov %s861_s13  ;;  %s1193_s15 = smov %s965_s18 }
 0x17b   :  { %35 = sbr.rel (!%p33_p2) target bundleno = 42 (0x2a), region = 83 }
 0x17d   : > { %s1190_s11 = smov %s1185_s19  ;;  %s1192_s13 = smov %s1186_s22 }
 0x182   :  { %475 = vsyncpa [#allocation7], 1 }
 0x183   :  { %477 = vsyncpa [#allocation7 + $0x1], 1 }
 0x184   :  { %478 = vsyncpa [#allocation8], 1 }
 0x185   :  { %480 = vsyncpa [#allocation8 + $0x1], 1 }

</bundles_post_ra>
